<compile_context>
chip_gen: v7x
topology: tpu7x:2x2x1
jax: 0.10.0
libtpu: 0.0.40
codegen_flags: <defaults>
</compile_context>

<pallas_src>
import jax
import jax.numpy as jnp
from jax import lax
from jax.experimental import pallas as pl
from jax.experimental.pallas import tpu as pltpu


def _make_balanced_bce_kernel(n_rows, tm, n_cols, binary_targets):
    """Kernel closure over static shape / tiling params."""
    inv_c = 1.0 / n_cols

    def kernel(in_ref, tgt_ref, out_ref):
        # in_ref/tgt_ref: (tm, C) row tile.  out_ref: (tm, 1) per-row partial loss.
        p = in_ref[...].astype(jnp.float32)
        t = tgt_ref[...].astype(jnp.float32)

        # beta_r = mean_c(targets)  -> (tm, 1); lane (XLU) reduction.
        beta = jnp.sum(t, axis=1, keepdims=True) * inv_c

        if binary_targets:
            # Single-log fast path; exact for targets in {0, 1}.
            q = jnp.where(t == 1.0, p, 1.0 - p)
            log_q = jnp.maximum(jnp.log(q), -100.0)
            s_pos = jnp.sum(t * log_q, axis=1, keepdims=True)      # sum_c t*log p
            s_all = jnp.sum(log_q, axis=1, keepdims=True)
            s_neg = s_all - s_pos                                   # sum_c (1-t)*log(1-p)
        else:
            # General (soft-target) two-log path: matches PyTorch exactly.
            log_p = jnp.maximum(jnp.log(p), -100.0)
            log_1mp = jnp.maximum(jnp.log(1.0 - p), -100.0)
            s_pos = jnp.sum(t * log_p, axis=1, keepdims=True)
            s_neg = jnp.sum((1.0 - t) * log_1mp, axis=1, keepdims=True)

        # Per-row loss; beta only touches (tm, 1) vectors (no lane broadcast).
        r = -(beta * s_pos + (1.0 - beta) * s_neg)                  # (tm, 1)

        i = pl.program_id(0)
        last = pl.num_programs(0) - 1

        # Full tiles: store directly, no masking cost.
        @pl.when(i < last)
        def _():
            out_ref[...] = r

        # Ragged last tile: SELECT invalid rows to 0 (r there may be NaN since
        # it was computed from uninitialized out-of-bounds block padding).
        @pl.when(i == last)
        def _():
            row = i * tm + lax.broadcasted_iota(jnp.int32, (tm, 1), 0)
            out_ref[...] = jnp.where(row < n_rows, r, 0.0)

    return kernel


def balanced_bce_loss(inputs, targets, *, tm=None, binary_targets=False):
    """inputs, targets: (N, C). Returns scalar f32 loss (sum over all elements).

    Targets (and inputs) may be narrower dtypes (e.g. bf16 / int8 labels);
    they are upcast to f32 inside the kernel.
    """
    n, c = inputs.shape
    assert targets.shape == (n, c)

    in_bytes = jnp.dtype(inputs.dtype).itemsize
    tgt_bytes = jnp.dtype(targets.dtype).itemsize
    row_bytes = c * (in_bytes + tgt_bytes)          # HBM bytes read per row

    # ---- generation-aware VMEM budget ----
    try:
        info = pltpu.get_tpu_info()
        vmem_cap = int(getattr(info, "vmem_capacity_bytes", 64 << 20))
    except Exception:
        vmem_cap = 64 << 20                          # conservative (v7x-sized)
    # ~48 MiB on v7x (64 MiB physical), 64 MiB on v5e/v6e (128 MiB physical).
    vmem_budget = min(vmem_cap * 3 // 4, 64 << 20)

    # ---- choose row tile ----
    n8 = ((n + 7) // 8) * 8
    if tm is None:
        # ~8 MiB of input per grid step amortizes the ~0.35us/step pipeline
        # overhead; the double-buffered footprint (2x) stays inside the budget.
        per_step_target = min(8 << 20, vmem_budget // 4)
        tm = per_step_target // row_bytes
        tm = max(8, min((tm // 8) * 8, 8192))
    tm = max(8, min((tm // 8) * 8, n8))
    # v7x has 2 TensorCores: ensure >=2 parallel tiles whenever possible.
    if n > 8:
        half = ((-(-n // 2)) + 7) // 8 * 8           # round_up(ceil(n/2), 8)
        tm = min(tm, half)

    num_tiles = pl.cdiv(n, tm)                        # ragged last tile masked in-kernel
    per_step_bytes = tm * row_bytes

    # Deeper input buffering only when steps are forced small on a real grid.
    use_buffered = per_step_bytes < (2 << 20) and num_tiles >= 4

    def in_spec():
        if use_buffered:
            return pl.BlockSpec((tm, c), lambda i: (i, 0),
                                pipeline_mode=pl.Buffered(3))
        return pl.BlockSpec((tm, c), lambda i: (i, 0))

    kernel = _make_balanced_bce_kernel(n, tm, c, binary_targets)

    partials = pl.pallas_call(
        kernel,
        out_shape=jax.ShapeDtypeStruct((num_tiles * tm, 1), jnp.float32),
        grid_spec=pltpu.PrefetchScalarGridSpec(
            num_scalar_prefetch=0,
            grid=(num_tiles,),
            in_specs=[in_spec(), in_spec()],
            out_specs=pl.BlockSpec((tm, 1), lambda i: (i, 0)),
        ),
        compiler_params=pltpu.CompilerParams(
            dimension_semantics=("parallel",),        # independent tiles / megacore
            vmem_limit_bytes=int(vmem_budget),
        ),
    )(inputs, targets)

    # Tiny final reduction (num_tiles*tm scalars) outside the kernel.
    return jnp.sum(partials)


def _reference(inputs, targets):
    c = targets.shape[1]
    beta = jnp.sum(targets, axis=1, keepdims=True) / c
    x = jnp.maximum(jnp.log(inputs), -100.0)
    y = jnp.maximum(jnp.log(1.0 - inputs), -100.0)
    l = -(beta * targets * x + (1.0 - beta) * (1.0 - targets) * y)
    return jnp.sum(l)


if __name__ == "__main__":
    key = jax.random.PRNGKey(0)
    k1, k2 = jax.random.split(key)

    N, C = 16, 256
    # probabilities strictly inside (0, 1), like sigmoid outputs
    inputs = jax.random.uniform(k1, (N, C), jnp.float32, minval=0.01, maxval=0.99)
    targets = (jax.random.uniform(k2, (N, C), jnp.float32) > 0.5).astype(jnp.float32)

    ref = _reference(inputs, targets)

    # Default (soft-target-safe, two-log) path.
    loss = balanced_bce_loss(inputs, targets)
    jax.block_until_ready(loss)
    assert jnp.allclose(loss, ref, rtol=1e-5, atol=1e-4), (loss, ref)

    # Binary-target single-log fast path (exact for 0/1 labels).
    loss_bin = balanced_bce_loss(inputs, targets, binary_targets=True)
    jax.block_until_ready(loss_bin)
    assert jnp.allclose(loss_bin, ref, rtol=1e-5, atol=1e-4), (loss_bin, ref)

    # Ragged-N path (in-kernel masking, no host pad) + narrow (bf16) targets.
    N2 = 13
    inputs2 = inputs[:N2]
    targets2 = targets[:N2].astype(jnp.bfloat16)      # exact for 0/1 labels
    loss2 = balanced_bce_loss(inputs2, targets2)
    jax.block_until_ready(loss2)
    ref2 = _reference(inputs2, targets[:N2])
    assert jnp.allclose(loss2, ref2, rtol=1e-5, atol=1e-4), (loss2, ref2)

    print("KERNEL_OK")
</pallas_src>

<mosaic_0001>
module attributes {stable_mosaic.version = 11 : i64} {
  func.func @kernel(%arg0: i32, %arg1: memref<8x256xf32, #tpu.memory_space<vmem>>, %arg2: memref<8x256xf32, #tpu.memory_space<vmem>>, %arg3: memref<8x1xf32, #tpu.memory_space<vmem>>) attributes {dimension_semantics = [#tpu.dimension_semantics<parallel>], iteration_bounds = array<i64: 2>, scalar_prefetch = 0 : i64, scratch_operands = 0 : i64, tpu.core_type = #tpu.core_type<tc>, window_params = [{transform_indices = @transform_0, window_bounds = array<i64: 8, 256>}, {transform_indices = @transform_1, window_bounds = array<i64: 8, 256>}, {transform_indices = @transform_2, window_bounds = array<i64: 8, 1>}]} {
    %c0 = arith.constant 0 : index
    %c0_0 = arith.constant 0 : index
    %0 = vector.load %arg1[%c0, %c0_0] : memref<8x256xf32, #tpu.memory_space<vmem>>, vector<8x256xf32>
    %c0_1 = arith.constant 0 : index
    %c0_2 = arith.constant 0 : index
    %1 = vector.load %arg2[%c0_1, %c0_2] : memref<8x256xf32, #tpu.memory_space<vmem>>, vector<8x256xf32>
    %cst = arith.constant dense<0.000000e+00> : vector<8xf32>
    %2 = vector.multi_reduction <add>, %1, %cst [1] : vector<8x256xf32> to vector<8xf32>
    %3 = vector.shape_cast %2 : vector<8xf32> to vector<8x1xf32>
    %cst_3 = arith.constant 3.906250e-03 : f32
    %4 = vector.broadcast %cst_3 : f32 to vector<8x1xf32>
    %5 = arith.mulf %3, %4 : vector<8x1xf32>
    %6 = math.log %0 : vector<8x256xf32>
    %cst_4 = arith.constant -1.000000e+02 : f32
    %7 = vector.broadcast %cst_4 : f32 to vector<8x256xf32>
    %8 = arith.maximumf %6, %7 : vector<8x256xf32>
    %cst_5 = arith.constant 1.000000e+00 : f32
    %9 = vector.broadcast %cst_5 : f32 to vector<8x256xf32>
    %10 = arith.subf %9, %0 : vector<8x256xf32>
    %11 = math.log %10 : vector<8x256xf32>
    %cst_6 = arith.constant -1.000000e+02 : f32
    %12 = vector.broadcast %cst_6 : f32 to vector<8x256xf32>
    %13 = arith.maximumf %11, %12 : vector<8x256xf32>
    %14 = arith.mulf %1, %8 : vector<8x256xf32>
    %cst_7 = arith.constant dense<0.000000e+00> : vector<8xf32>
    %15 = vector.multi_reduction <add>, %14, %cst_7 [1] : vector<8x256xf32> to vector<8xf32>
    %16 = vector.shape_cast %15 : vector<8xf32> to vector<8x1xf32>
    %cst_8 = arith.constant 1.000000e+00 : f32
    %17 = vector.broadcast %cst_8 : f32 to vector<8x256xf32>
    %18 = arith.subf %17, %1 : vector<8x256xf32>
    %19 = arith.mulf %18, %13 : vector<8x256xf32>
    %cst_9 = arith.constant dense<0.000000e+00> : vector<8xf32>
    %20 = vector.multi_reduction <add>, %19, %cst_9 [1] : vector<8x256xf32> to vector<8xf32>
    %21 = vector.shape_cast %20 : vector<8xf32> to vector<8x1xf32>
    %22 = arith.mulf %5, %16 : vector<8x1xf32>
    %cst_10 = arith.constant 1.000000e+00 : f32
    %23 = vector.broadcast %cst_10 : f32 to vector<8x1xf32>
    %24 = arith.subf %23, %5 : vector<8x1xf32>
    %25 = arith.mulf %24, %21 : vector<8x1xf32>
    %26 = arith.addf %22, %25 : vector<8x1xf32>
    %cst_11 = arith.constant 0.000000e+00 : f32
    %27 = vector.broadcast %cst_11 : f32 to vector<8x1xf32>
    %28 = arith.subf %27, %26 : vector<8x1xf32>
    %c1_i32 = arith.constant 1 : i32
    %29 = arith.cmpi slt, %arg0, %c1_i32 : i32
    %30 = arith.extui %29 : i1 to i32
    %c0_i32 = arith.constant 0 : i32
    %31 = arith.cmpi ne, %30, %c0_i32 : i32
    scf.if %31 {
      %c0_14 = arith.constant 0 : index
      %c0_15 = arith.constant 0 : index
      %35 = vector.load %arg3[%c0_14, %c0_15] : memref<8x1xf32, #tpu.memory_space<vmem>>, vector<8x1xf32>
      tpu.vector_store %arg3[%c0_14, %c0_15], %28 {strides = array<i32>} : memref<8x1xf32, #tpu.memory_space<vmem>>, vector<8x1xf32>,
    } else {
    }
    %c1_i32_12 = arith.constant 1 : i32
    %32 = arith.cmpi eq, %arg0, %c1_i32_12 : i32
    %33 = arith.extui %32 : i1 to i32
    %c0_i32_13 = arith.constant 0 : i32
    %34 = arith.cmpi ne, %33, %c0_i32_13 : i32
    scf.if %34 {
      %c8_i32 = arith.constant 8 : i32
      %35 = arith.muli %arg0, %c8_i32 : i32
      %36 = tpu.iota {dimensions = array<i32: 0>} : vector<8x1xi32>
      %37 = vector.broadcast %35 : i32 to vector<8x1xi32>
      %38 = arith.addi %37, %36 : vector<8x1xi32>
      %c16_i32 = arith.constant 16 : i32
      %39 = vector.broadcast %c16_i32 : i32 to vector<8x1xi32>
      %40 = arith.cmpi slt, %38, %39 : vector<8x1xi32>
      %cst_14 = arith.constant 0.000000e+00 : f32
      %41 = vector.broadcast %cst_14 : f32 to vector<8x1xf32>
      %42 = arith.select %40, %28, %41 : vector<8x1xi1>, vector<8x1xf32>
      %c0_15 = arith.constant 0 : index
      %c0_16 = arith.constant 0 : index
      %43 = vector.load %arg3[%c0_15, %c0_16] : memref<8x1xf32, #tpu.memory_space<vmem>>, vector<8x1xf32>
      tpu.vector_store %arg3[%c0_15, %c0_16], %42 {strides = array<i32>} : memref<8x1xf32, #tpu.memory_space<vmem>>, vector<8x1xf32>,
    } else {
    }
    return
  }
  func.func @transform_0(%arg0: i32) -> (i32, i32) {
    %c0_i32 = arith.constant 0 : i32
    %c0_i32_0 = arith.constant 0 : i32
    return %arg0, %c0_i32 : i32, i32
  }
  func.func @transform_1(%arg0: i32) -> (i32, i32) {
    %c0_i32 = arith.constant 0 : i32
    %c0_i32_0 = arith.constant 0 : i32
    return %arg0, %c0_i32 : i32, i32
  }
  func.func @transform_2(%arg0: i32) -> (i32, i32) {
    %c0_i32 = arith.constant 0 : i32
    %c0_i32_0 = arith.constant 0 : i32
    return %arg0, %c0_i32 : i32, i32
  }
}

</mosaic_0001>

<bundles_post_ra>
// kernel: tpu_custom_call.1
= control target key start
LH: loop header
LB: loop body
LE: loop exit
PB: predicated region body
PF: predicated region fallthrough
CT: control target
= control target key end

     0   :  { %7 = vsyncpa [#allocation3], 0  ;;  %s690_s0 = inlined_call_operand.hbm [shape: f32[16,256], index: 0, kind: input, shape index: {}]   ;;  %s691_s1 = inlined_call_operand.hbm [shape: f32[16,256], index: 1, kind: input, shape index: {}]   ;;  %s692_s2 = inlined_call_operand.vmem [shape: f32[16,1], index: 2, kind: output, shape index: {}]  }
   0x1   :  { %9 = vsyncpa [#allocation3 + $0x1], 0 }
   0x2   :  { %10 = vsyncpa [#allocation5], 0 }
   0x3   :  { %12 = vsyncpa [#allocation5 + $0x1], 0  ;;  %s533_s9 = smov 0   ;;  %s535_s10 = smov 0  }
   0x4   :  { %s537_s11 = smov 0   ;;  %s539_s12 = smov 0  }
   0x5 LB: > { %s552_s13 = sadd.s32 4294967295, %s514_s12   ;;  %s555_s14 = sadd.s32 1, %s514_s12   ;;  %s514_s12 = sphi %s539_s12, %s704_s12   ;;  %s510_s11 = sphi %s537_s11, %s703_s11   ;;  %s506_s10 = sphi %s535_s10, %s702_s10   ;;  %s502_s9 = sphi %s533_s9, %s701_s9  }
   0x6   : > { %s22_s15 = ssub.s32 %s514_s12, %s555_s14  ;;  %s25_s16 = sadd.s32 1, %s510_s11 }
   0x7   : > { %p23_p0 = scmp.eq.s32.totalorder %s22_s15, 0  ;;  %p32_p1 = scmp.ne.s32.totalorder %s510_s11, %s506_s10 }
   0x8   : > { %p33_p2 = scmp.eq.s32.totalorder %s514_s12, 0  ;;  %p38_p3 = scmp.ne.s32.totalorder %s506_s10, %s502_s9 }
   0x9   : > { %s565_s17 = scalar_select %p23_p0, %s510_s11, %s25_s16  }
   0xa   : > { %p34_p4 = por %p33_p2, %p32_p1  ;;  %p39_p5 = scmp.eq.s32.totalorder %s552_s13, 0 }
   0xb   : > { %p375_p6 = scmp.lt.s32.totalorder %s514_s12, 2  ;;  %s574_s19 = sand.u32 1, %s510_s11  }
   0xc   : > { %p569_p7 = por %p39_p5, %p38_p3  ;;  %s347_s20 = sshll.u32 %s574_s19, 4 }
   0xd   : > { %s362_s21 = sshll.u32 %s514_s12, 8  ;;  %s118_s25 = scalar_lea.vmem [#allocation2], %s347_s20 }
   0xe   : > { %s694_s18 = scalar_select %p569_p7, 1, 0 }
   0xf   : > { %s583_s24 = scalar_lea.hbm %s690_s0, %s362_s21  ;;  %s126_s26 = sshll.u32 %s118_s25, 4  ;;  %s587_s26 = int_to_ptr.vmem [resolvable:$true] %s126_s26 }
  0x10   : > { %p589_p8 = pnand %p375_p6, %p34_p4  ;;  %s115_s28 = scalar_lea.sflag [#allocation3], %s574_s19 }
  0x11   : > { %s416_s29 = scalar_lea.hbm %s583_s24, 256  ;;  %s421_s4 = scalar_lea.hbm %s690_s0, 512 }
  0x12   : > { %p417_p11 = scmp.ne.s32.totalorder %s583_s24, %s416_s29  ;;  %p418_p12 = pneg %p589_p8 }
  0x13   : > { %p422_p1 = scmp.lt.u32.totalorder %s583_s24, %s690_s0  ;;  %p423_p2 = scmp.lt.u32.totalorder %s421_s4, %s416_s29 }
  0x14   : > { %p419_p13 = pnand %p418_p12, %p417_p11  ;;  %p425_p4 = scmp.lt.u32.totalorder %s416_s29, %s583_s24 }
  0x15   : > { %p424_p3 = por %p423_p2, %p422_p1 }
  0x16   : > { %p420_p0 = pneg %p419_p13 }
  0x17   : > { %p426_p5 = por %p425_p4, %p424_p3 }
  0x19   : > { %p427_p6 = pnand %p426_p5, %p420_p0 }
  0x1b   : > { %430 = shalt.err (!%p427_p6)
}
  0x1c   : > { %s431_s7 = scalar_lea.vmem %s587_s26, 256  ;;  %s516_s8 = smov [#allocation2]  }
  0x1d   : > { %p432_p11 = scmp.ne.s32.totalorder %s587_s26, %s431_s7  ;;  %s436_s9 = sshll.u32 %s516_s8, 4  ;;  %s437_s9 = int_to_ptr.vmem [resolvable:$false] %s436_s9 }
  0x1e   : > { %s438_s15 = scalar_lea.vmem %s437_s9, 512  ;;  %p439_p10 = scmp.lt.s32.totalorder %s587_s26, %s437_s9 }
  0x1f   : > { %p434_p13 = pnand %p432_p11, %p418_p12  ;;  %p440_p1 = scmp.lt.s32.totalorder %s438_s15, %s431_s7 }
  0x21   : > { %p435_p9 = pneg %p434_p13  ;;  %p441_p2 = por %p440_p1, %p439_p10 }
  0x23   : > { %p442_p3 = pnand %p441_p2, %p435_p9 }
  0x25   : > { %445 = shalt.err (!%p442_p3)
}
  0x26   : > { %371 = dma.hbm_to_vmem [thread:$0]  (!%p589_p8), %s583_s24, 256, %s587_s26, %s115_s28  }
  0x27   : > { %p696_p0 = scmp.lt.s32.totalorder %s514_s12, 3  ;;  %p697_p4 = scmp.ge.s32.totalorder %s514_s12, 1 }
  0x28   : > { %s634_s25 = scalar_lea.hbm %s691_s1, %s362_s21  ;;  %s137_s29 = scalar_lea.vmem [#allocation4], %s347_s20 }
  0x29   : > { %p625_p5 = pnand %p697_p4, %p696_p0  ;;  %s145_s30 = sshll.u32 %s137_s29, 4  ;;  %s146_s30 = int_to_ptr.vmem [resolvable:$true] %s145_s30 }
  0x2a   : > { %s134_s24 = scalar_lea.sflag [#allocation5], %s574_s19  ;;  %s446_s26 = scalar_lea.hbm %s634_s25, 256 }
  0x2b   : > { %s698_s16 = scalar_select %p625_p5, 1, 0 }
  0x2c   : > { %p447_p9 = scmp.ne.s32.totalorder %s634_s25, %s446_s26  ;;  %s451_s21 = scalar_lea.hbm %s691_s1, 512 }
  0x2d   : > { %p452_p11 = scmp.lt.u32.totalorder %s634_s25, %s691_s1  ;;  %p453_p13 = scmp.lt.u32.totalorder %s451_s21, %s446_s26 }
  0x2e   : > { %p449_p10 = pnand %p447_p9, %p418_p12  ;;  %p455_p2 = scmp.lt.u32.totalorder %s446_s26, %s634_s25 }
  0x2f   : > { %p454_p1 = por %p453_p13, %p452_p11 }
  0x30   : > { %p450_p6 = pneg %p449_p10 }
  0x31   : > { %p456_p3 = por %p455_p2, %p454_p1 }
  0x33   : > { %p457_p0 = pnand %p456_p3, %p450_p6 }
  0x35   : > { %460 = shalt.err (!%p457_p0)
}
  0x36   : > { %s461_s19 = scalar_lea.vmem %s146_s30, 256  ;;  %s517_s20 = smov [#allocation4]  }
  0x37   : > { %p462_p4 = scmp.ne.s32.totalorder %s146_s30, %s461_s19  ;;  %s466_s5 = sshll.u32 %s517_s20, 4  ;;  %s467_s5 = int_to_ptr.vmem [resolvable:$false] %s466_s5 }
  0x38   : > { %s468_s6 = scalar_lea.vmem %s467_s5, 512  ;;  %p469_p7 = scmp.lt.s32.totalorder %s146_s30, %s467_s5 }
  0x39   : > { %p464_p9 = pnand %p462_p4, %p418_p12  ;;  %p470_p5 = scmp.lt.s32.totalorder %s468_s6, %s461_s19 }
  0x3b   : > { %p465_p10 = pneg %p464_p9  ;;  %p471_p11 = por %p470_p5, %p469_p7 }
  0x3d   : > { %p472_p13 = pnand %p471_p11, %p465_p10 }
  0x3f   : > { %475 = shalt.err (!%p472_p13)
}
  0x40   : > { %374 = dma.hbm_to_vmem [thread:$0]  (!%p589_p8), %s634_s25, 256, %s146_s30, %s134_s24  }
  0x41   : > { %p699_p6 = scmp.ne.s32.totalorder %s698_s16, 0 }
  0x42   : > { %s156_s7 = sand.u32 (!%p699_p6), 1, %s506_s10   ;;  %p700_p12 = scmp.ne.s32.totalorder (!%p699_p6), %s694_s18, 0 }
  0x43   : > { %154 = sbr.rel (%p699_p6) target bundleno = 260 (0x104), region = 28  ;;  %s354_s8 = sshll.u32 (!%p699_p6), %s156_s7, 4 }
  0x44   : > { %s157_s9 = scalar_lea.sflag (!%p699_p6), [#allocation3], %s156_s7  ;;  %s160_s15 = scalar_lea.vmem (!%p699_p6), [#allocation2], %s354_s8 }
  0x4a   : > { %493 = dma.done.wait (%p700_p12), %s157_s9, 256  }
  0x4b   : > { %495 = vsyncadd (%p700_p12), %s157_s9, 4294967040  ;;  %s166_s22 = scalar_lea.sflag [#allocation5], %s156_s7  ;;  %s169_s23 = scalar_lea.vmem [#allocation4], %s354_s8 }
  0x4c   : > { %497 = dma.done.wait (%p700_p12), %s166_s22, 256  }
  0x4d   : > { %499 = vsyncadd (%p700_p12), %s166_s22, 4294967040  ;;  %v200_v0 = vld [vmem:[%s169_s23] sm:$0xff]  ;;  %v201_v1 = vld [vmem:[%s169_s23 + $0x8] sm:$0xff]  ;;  %p194_p7 = scmp.lt.s32.totalorder %s552_s13, 1  ;;  %p357_p8 = scmp.ge.s32.totalorder %s552_s13, 1 }
  0x4e   : > { %v198_v2 = vld [vmem:[%s160_s15] sm:$0xff]  ;;  %v202_v3 = vadd.f32 %v201_v1, %v200_v0  ;;  %v199_v4 = vld [vmem:[%s160_s15 + $0x8] sm:$0xff]  ;;  %v225_v15 = vsub.f32 1.0, %v200_v0  ;;  %v226_v18 = vsub.f32 1.0, %v201_v1  ;;  %vm241_vm0 = vcmask (!%p357_p8), 7168  }
  0x4f   : > { %408 = vlog2.f32 %v198_v2  ;;  %v212_v5 = vsub.f32 1.0, %v198_v2  ;;  %v213_v6 = vsub.f32 1.0, %v199_v4  ;;  %s195_s18 = scalar_select %p194_p7, %s552_s13, 1 }
  0x50   : > { %410 = vlog2.f32 %v199_v4  ;;  %203 = vadd.xlane.f32.xlu0 %v202_v3 }
  0x51   : > { %412 = vlog2.f32 %v212_v5  ;;  %s356_s27 = sshll.u32 %s195_s18, 3 }
  0x52   : > { %414 = vlog2.f32 %v213_v6  ;;  %s197_s29 = scalar_lea.vmem %s692_s2, %s356_s27 }
  0x59   : > { %v409_v7 = vpop.eup %408 }
  0x5a   : > { %v411_v8 = vpop.eup %410  ;;  %v207_v9 = vmul.f32 0.6931472, %v409_v7 }
  0x5b   : > { %v413_v10 = vpop.eup %412  ;;  %v209_v11 = vmul.f32 0.6931472, %v411_v8 }
  0x5c   : > { %v415_v12 = vpop.eup %414  ;;  %v210_v13 = vmax.f32 %v207_v9, -100.0  ;;  %v215_v14 = vmul.f32 0.6931472, %v413_v10 }
  0x5d   : > { %v211_v16 = vmax.f32 %v209_v11, -100.0  ;;  %v217_v17 = vmul.f32 0.6931472, %v415_v12 }
  0x5e   : > { %v220_v19 = vmul.f32 %v210_v13, %v200_v0  ;;  %v218_v20 = vmax.f32 %v215_v14, -100.0 }
  0x5f   : > { %v221_v21 = vmul.f32 %v211_v16, %v201_v1  ;;  %v219_v22 = vmax.f32 %v217_v17, -100.0 }
  0x60   : > { %v227_v23 = vmul.f32 %v225_v15, %v218_v20 }
  0x61   : > { %v222_v24 = vadd.f32 %v221_v21, %v220_v19  ;;  %v228_v25 = vmul.f32 %v226_v18, %v219_v22 }
  0x63   : > { %223 = vadd.xlane.f32.xlu0 %v222_v24  ;;  %v229_v26 = vadd.f32 %v228_v25, %v227_v23 }
  0x65   : > { %230 = vadd.xlane.f32.xlu1 %v229_v26 }
  0xdd   : > { %v204_v27 = vpop.xlane.xlu0 %203 }
  0xde   : > { %v205_v28 = vmul.f32 0.00390625, %v204_v27 }
  0xe0   : > { %v233_v29 = vsub.f32 1.0, %v205_v28 }
  0xf0   : > { %v224_v30 = vpop.xlane.xlu0 %223 }
  0xf1   : > { %v232_v32 = vmul.f32 %v224_v30, %v205_v28  ;;  %240 = sbr.rel (%p357_p8) target bundleno = 250 (0xfa), region = 40 }
  0xf2   : > { %v231_v31 = vpop.xlane.xlu1 %230 }
  0xf3   : > { %v234_v33 = vmul.f32 %v233_v29, %v231_v31 }
  0xf5   : > { %v235_v34 = vadd.f32 %v234_v33, %v232_v32 }
  0xf7   : > { %v236_v35 = vsub.f32 0.0, %v235_v34 }
  0xf9   : > { %242 = vst.msk [vmem:[%s197_s29] sm:$0xff] %vm241_vm0, %v236_v35 }
  0xfa PF: > { %p358_p5 = scmp.ne.s32.totalorder %s552_s13, 1 }
  0xfb   : > { %s359_s30 = sshll.u32 (!%p358_p5), %s552_s13, 3  ;;  %v248_v36 = vlaneseq (!%p358_p5)  ;;  %vm254_vm1 = vcmask (!%p358_p5), 7168  }
  0xfc   : > { %246 = sbr.rel (%p358_p5) target bundleno = 260 (0x104), region = 44  ;;  %v250_v37 = vstv (!%p358_p5), %s359_s30 }
  0xfd   : > { %v249_v38 = vshrl.u32 (!%p358_p5), %v248_v36, 7 }
  0xff   : > { %v251_v39 = vadd.s32 (!%p358_p5), %v250_v37, %v249_v38 }
 0x101   : > { %vm252_vm2 = vcmp.lt.s32.totalorder (!%p358_p5), %v251_v39, 16 }
 0x102   : > { %v253_v40 = vsel (!%p358_p5), %vm252_vm2, %v236_v35, 0.0 }
 0x103   : > { %255 = vst.msk [vmem:[%s197_s29] sm:$0xff] %vm254_vm1, %v253_v40 }
 0x104 PF: > { %p15_p1 = scmp.ge.s32.totalorder %s555_s14, 4   ;;  %s701_s9 = smov %s506_s10 }
 0x105   : > { %s702_s10 = smov %s510_s11  ;;  %s703_s11 = smov %s565_s17 }
 0x106   : > { %s704_s12 = smov %s555_s14  ;;  %17 = sbr.rel (!%p15_p1) target bundleno = 5 (0x5), region = 89 }
 0x10d   :  { %275 = vsyncpa [#allocation3], 1 }
 0x10e   :  { %277 = vsyncpa [#allocation3 + $0x1], 1 }
 0x10f   :  { %278 = vsyncpa [#allocation5], 1 }
 0x110   :  { %280 = vsyncpa [#allocation5 + $0x1], 1 }

</bundles_post_ra>
